<compile_context>
chip_gen: v7x
topology: tpu7x:2x2x1
jax: 0.10.0
libtpu: 0.0.40
codegen_flags: <defaults>
</compile_context>

<pallas_src>
import functools
import math

import jax
import jax.numpy as jnp
from jax.experimental import pallas as pl
from jax.experimental.pallas import tpu as pltpu

LRELU_SLOPE = 0.2
LRELU_GAIN = math.sqrt(2.0)


# ----------------------------------------------------------------------------
# Pallas kernel: fused modulated 3x3 conv, TH output rows per grid step.
#
#   out[b, y0:y0+TH] = lrelu( demod[b] * ( im2col(x_pad[b]) @ (w * s[b]) ) + bias )
#
# with the lrelu gain folded into demod/bias.
# ----------------------------------------------------------------------------
def _modconv3x3_block_kernel(xpad_ref, w_ref, d_ref, b_ref, o_ref, *, row_block, act):
    # xpad_ref: (1, Hp, Wp, Cin)  bf16  zero-padded feature map of batch b (resident)
    # w_ref:    (1, 9*Cin, Cout)  bf16  per-batch modulated weight, rows ordered (kh,kw,cin)
    # d_ref:    (1, 1, Cout)      f32   demodulation * gain
    # b_ref:    (1, Cout)         f32   bias * gain
    # o_ref:    (1, TH, W, Cout)  bf16
    TH = row_block
    Wp = xpad_ref.shape[2]
    Cin = xpad_ref.shape[3]
    W = Wp - 2
    Cout = o_ref.shape[3]
    M = TH * W

    row0 = pl.multiple_of(pl.program_id(1) * TH, TH)
    slab = xpad_ref[0, pl.ds(row0, TH + 2), :, :]            # (TH+2, Wp, Cin) bf16
    w_all = w_ref[0]                                         # (9*Cin, Cout)   bf16

    if Cin % 128 == 0:
        # v6e / v7x path: one MXU dot with K = 9*Cin (fills the 256-deep MXU).
        patches = jnp.concatenate(
            [slab[i:i + TH, j:j + W, :].reshape(M, Cin)
             for i in range(3) for j in range(3)], axis=-1)  # (M, 9*Cin)
        acc = jnp.dot(patches, w_all, preferred_element_type=jnp.float32)
    else:
        # per-tap K = Cin dots (v5e-native; also the small-channel path).
        acc = jnp.zeros((M, Cout), jnp.float32)
        for i in range(3):
            for j in range(3):
                tap = i * 3 + j
                a = slab[i:i + TH, j:j + W, :].reshape(M, Cin)
                acc += jnp.dot(a, w_all[tap * Cin:(tap + 1) * Cin, :],
                               preferred_element_type=jnp.float32)

    y = acc * d_ref[...].reshape(1, Cout) + b_ref[...].reshape(1, Cout)
    if act:
        # gain already folded into d_ref / b_ref (lrelu is positively homogeneous)
        y = jnp.where(y >= 0.0, y, LRELU_SLOPE * y)
    o_ref[...] = y.reshape(1, TH, W, Cout).astype(o_ref.dtype)


def _pick_row_block(H, W, Cout):
    """Largest row block (divisor of H) keeping one output block under ~2 MiB."""
    th = H
    while th > 1 and th % 2 == 0 and th * W * Cout * 2 > (2 << 20):
        th //= 2
    return th


def modulated_conv3x3(x, weight, wscale, bias, s, act=True):
    """StyleGAN2 modulated + demodulated 3x3 conv (stride 1, pad 1), NHWC.

    x:      [B, H, W, Cin]     feature map (bf16 on the wire)
    weight: [Cout, Cin, 3, 3]  unscaled conv weight (f32)
    wscale: float              equalized-lr scale
    bias:   [Cout]
    s:      [B, Cin]           per-sample modulation
    returns [B, H, W, Cout] bf16
    """
    B, H, W, Cin = x.shape
    Cout = weight.shape[0]

    w = weight * wscale                                    # [Cout, Cin, 3, 3] f32
    w2 = jnp.sum(w * w, axis=(2, 3))                       # [Cout, Cin]
    demod = jax.lax.rsqrt((s * s) @ w2.T + 1e-8)           # [B, Cout]

    gain = LRELU_GAIN if act else 1.0
    d3 = (demod * gain).reshape(B, 1, Cout).astype(jnp.float32)
    b2 = (bias * gain).reshape(1, Cout).astype(jnp.float32)

    # Per-batch modulated weight: w_mod[b, (kh,kw,cin), cout] = w[cout,cin,kh,kw] * s[b,cin]
    # (s-scale done in f32, then cast to bf16 so demod stays consistent).
    w_mat = jnp.transpose(w, (2, 3, 1, 0)).reshape(9, Cin, Cout)                  # f32
    w_mod = (w_mat[None] * s[:, None, :, None]).reshape(B, 9 * Cin, Cout)
    w_mod = w_mod.astype(jnp.bfloat16)

    # TODO(synk): this pad is one whole-map XLA pass; folding top/bottom halo handling
    # into the kernel (pl.Element / clamped index_map) would remove it.
    x_pad = jnp.pad(x.astype(jnp.bfloat16), ((0, 0), (1, 1), (1, 1), (0, 0)))
    Hp, Wp = H + 2, W + 2

    TH = _pick_row_block(H, W, Cout)
    grid = (B, H // TH)

    est_bytes = 2 * (Hp * Wp * Cin + TH * W * Cout + 9 * Cin * Cout) * 2 + (1 << 18)
    vmem_limit = int(min(max(4 * est_bytes, 16 << 20), 48 << 20))

    out = pl.pallas_call(
        functools.partial(_modconv3x3_block_kernel, row_block=TH, act=act),
        out_shape=jax.ShapeDtypeStruct((B, H, W, Cout), jnp.bfloat16),
        grid=grid,
        in_specs=[
            # padded image of batch b, VMEM-resident across the row-block axis
            pl.BlockSpec((1, Hp, Wp, Cin), lambda b, y: (b, 0, 0, 0)),
            # per-batch modulated weight (resident across the row-block axis)
            pl.BlockSpec((1, 9 * Cin, Cout), lambda b, y: (b, 0, 0)),
            pl.BlockSpec((1, 1, Cout), lambda b, y: (b, 0, 0)),   # demod*gain
            pl.BlockSpec((1, Cout), lambda b, y: (0, 0)),         # bias*gain
        ],
        out_specs=pl.BlockSpec((1, TH, W, Cout), lambda b, y: (b, y, 0, 0)),
        compiler_params=pltpu.CompilerParams(
            dimension_semantics=("parallel", "parallel"),
            vmem_limit_bytes=vmem_limit),
    )(x_pad, w_mod, d3, b2)
    return out


# ----------------------------------------------------------------------------
# Glue helpers (plain JAX)
# ----------------------------------------------------------------------------
def upsample2x(x):  # NHWC nearest-neighbour
    # TODO(synk): reference StyleGAN2 uses FIR/blur upsampling; fusing this repeat
    # into the conv kernel's index_map (+ in-kernel lane repeat) would remove the
    # 4x-size HBM materialization on upsampling layers.
    return jnp.repeat(jnp.repeat(x, 2, axis=1), 2, axis=2)


# ----------------------------------------------------------------------------
# Modules (functional, param dicts)
# ----------------------------------------------------------------------------
def init_equal_linear(key, in_dim, out_dim, lr_mul=1.0, bias_init=0.0):
    w = jax.random.normal(key, (in_dim, out_dim), jnp.float32) / lr_mul
    b = jnp.full((out_dim,), bias_init, jnp.float32)
    return {"w": w, "b": b, "scale": (1.0 / math.sqrt(in_dim)) * lr_mul, "lr_mul": lr_mul}


def equal_linear(p, x, act=False):
    # Tiny GEMM (N = style_dim / in_ch): kept in plain XLA (lane-sparse) per review.
    y = x @ (p["w"] * p["scale"]) + p["b"] * p["lr_mul"]
    if act:
        y = jnp.where(y >= 0, y, LRELU_SLOPE * y) * LRELU_GAIN
    return y


def init_style_block(key, in_ch, out_ch, style_dim, upsample):
    k1, k2 = jax.random.split(key)
    return {
        "mod": init_equal_linear(k1, style_dim, in_ch, bias_init=1.0),
        "weight": jax.random.normal(k2, (out_ch, in_ch, 3, 3), jnp.float32),
        "bias": jnp.zeros((out_ch,), jnp.float32),
        "upsample": upsample,
        "wscale": 1.0 / math.sqrt(in_ch * 9),
    }


def style_block(p, x, style):
    # TODO(synk): per-pixel noise injection of the reference StyleBlock is omitted.
    s = equal_linear(p["mod"], style)                    # [B, Cin]
    if p["upsample"]:
        x = upsample2x(x)
    return modulated_conv3x3(x, p["weight"], p["wscale"], p["bias"], s, act=True)


def init_to_rgb(key, in_ch, style_dim, upsample):
    k1, k2 = jax.random.split(key)
    return {
        "mod": init_equal_linear(k1, style_dim, in_ch, bias_init=1.0),
        "weight": jax.random.normal(k2, (3, in_ch, 1, 1), jnp.float32),
        "bias": jnp.zeros((3,), jnp.float32),
        "upsample": upsample,
        "wscale": 1.0 / math.sqrt(in_ch),
    }


def to_rgb(p, x, style, skip=None):
    # N=3 output is lane-sparse: plain XLA.  Modulation is folded into a per-batch
    # (C, 3) weight so the bf16 feature map is consumed directly (no f32 x*s temp).
    B, H, W, C = x.shape
    s = equal_linear(p["mod"], style)                         # [B, C] f32
    w = (p["weight"] * p["wscale"]).reshape(3, C)             # [3, C] f32
    w_b = (s[:, :, None] * w.T[None, :, :]).astype(jnp.bfloat16)   # [B, C, 3]
    out = jnp.einsum("bhwc,bcr->bhwr", x.astype(jnp.bfloat16), w_b,
                     preferred_element_type=jnp.float32) + p["bias"]
    if skip is not None:
        if p["upsample"]:
            skip = upsample2x(skip)
        out = out + skip
    return out


def init_eigenspace(key, res, channel, style_dim):
    # TODO(synk): exact EigenSpace_2style definition not provided; modeled as a learned
    # basis perturbation of the style vector, scaled by the per-layer `factor`.
    return {"basis": jax.random.normal(key, (style_dim, style_dim), jnp.float32) * 0.02}


def eigenspace(p, style, factor):
    return style + jnp.float32(factor) * (style @ p["basis"])


def init_const(key, channel):
    return {"const": jax.random.normal(key, (4, 4, channel), jnp.float32)}


def const_input(p, batch):
    c = p["const"]
    return jnp.broadcast_to(c[None], (batch, 4, 4, c.shape[-1]))


NUM_MAPPING_LAYERS = 2  # TODO(synk): MappingNetwork layer count not given; StyleGAN2 uses 8.


def init_mapping(key, style_dim, n_styles, lr_mlp):
    keys = jax.random.split(key, NUM_MAPPING_LAYERS)
    layers = [init_equal_linear(k, style_dim, style_dim, lr_mul=lr_mlp) for k in keys]
    return {"layers": layers, "n_styles": n_styles}


def mapping(p, z):
    x = z * jax.lax.rsqrt(jnp.mean(z * z, axis=-1, keepdims=True) + 1e-8)  # pixel norm
    for layer in p["layers"]:
        x = equal_linear(layer, x, act=True)
    return jnp.broadcast_to(x[:, None, :], (x.shape[0], p["n_styles"], x.shape[-1]))


# ----------------------------------------------------------------------------
# SynthesisBlock_Mode2 / SynthesisNetwork_Mode2 / Generator_Mode2
# ----------------------------------------------------------------------------
def init_synth_block(key, in_ch, out_ch, style_dim, res):
    keys = jax.random.split(key, 6)
    p = {"in_channel": in_ch, "conv_num": 0, "torgb_num": 1, "subspaces": []}
    ki = 0
    if in_ch != 0:
        p["conv0"] = init_style_block(keys[ki], in_ch, out_ch, style_dim, True); ki += 1
        p["conv_num"] += 1
        p["subspaces"].append(init_eigenspace(keys[ki], res, out_ch, style_dim)); ki += 1
    p["conv1"] = init_style_block(keys[ki], out_ch, out_ch, style_dim, False); ki += 1
    p["conv_num"] += 1
    p["subspaces"].append(init_eigenspace(keys[ki], res, out_ch, style_dim)); ki += 1
    p["torgb"] = init_to_rgb(keys[ki], out_ch, style_dim, upsample=(in_ch != 0)); ki += 1
    p["subspaces"].append(init_eigenspace(keys[ki], res, 3, style_dim)); ki += 1
    return p


def synth_block(p, x, style, sub_factor, skip=None):
    styles = [style[:, i, :] for i in range(style.shape[1])]          # unbind(dim=1)
    style_list = [eigenspace(sp, st, f)
                  for sp, st, f in zip(p["subspaces"], styles, sub_factor)]
    it = iter(style_list)
    if skip is None:
        out = style_block(p["conv1"], x, next(it))
    else:
        out = style_block(p["conv0"], x, next(it))
        out = style_block(p["conv1"], out, next(it))
    skip = to_rgb(p["torgb"], out, next(it), skip)
    return out, skip


def init_synthesis(key, resolution, style_dim, channel_base, channel_max):
    res_log2 = int(math.log(resolution, 2))
    res_list = [2 ** i for i in range(2, res_log2 + 1)]
    channels = {r: min(channel_base // r, channel_max) for r in res_list}
    keys = jax.random.split(key, len(res_list) + 1)
    blocks = []
    style_num = 1
    for i, r in enumerate(res_list):
        in_ch = channels[r // 2] if r > 4 else 0
        out_ch = channels[r]
        b = init_synth_block(keys[i], in_ch, out_ch, style_dim, r)
        blocks.append(b)
        style_num += b["conv_num"]
    return {"const": init_const(keys[-1], channels[4]),
            "blocks": blocks, "style_num": style_num}


def synthesis(p, styles, sub_factor):
    block_style, block_factor = [], []
    style_idx = 0
    for b in p["blocks"]:
        n = b["conv_num"] + b["torgb_num"]
        block_style.append(styles[:, style_idx:style_idx + n, :])
        block_factor.append(sub_factor[style_idx:style_idx + n])
        style_idx += b["conv_num"]
    x = const_input(p["const"], styles.shape[0])
    out = skip = None
    for b, st, fac in zip(p["blocks"], block_style, block_factor):
        if b["in_channel"] == 0:
            out, skip = synth_block(b, x, st, fac)
        else:
            out, skip = synth_block(b, out, st, fac, skip=skip)
    return skip  # NHWC image (f32)


def init_generator(key, resolution, style_dim, lr_mlp=0.01,
                   channel_base=32768, channel_max=128):
    k1, k2 = jax.random.split(key)
    syn = init_synthesis(k1, resolution, style_dim, channel_base, channel_max)
    mp = init_mapping(k2, style_dim, syn["style_num"], lr_mlp)
    return {"synthesis": syn, "mapping": mp}


def generator(p, latents, sub_factor=None, return_styles=False):
    if sub_factor is None:
        sub_factor = [1.0] * p["synthesis"]["style_num"]
    styles = mapping(p["mapping"], latents)
    img_nhwc = synthesis(p["synthesis"], styles, sub_factor)
    img = jnp.transpose(img_nhwc, (0, 3, 1, 2))  # back to NCHW, matching PyTorch output
    if return_styles:
        return img, styles
    return img


# ----------------------------------------------------------------------------
if __name__ == "__main__":
    resolution = 16          # small synthetic config (reference default is 1024)
    style_dim = 32           # (reference default is 512)
    batch = 2

    key = jax.random.PRNGKey(0)
    pkey, zkey = jax.random.split(key)
    params = init_generator(pkey, resolution, style_dim, lr_mlp=0.01,
                            channel_base=256, channel_max=32)
    latents = jax.random.normal(zkey, (batch, style_dim), jnp.float32)

    img = generator(params, latents)
    img = jax.block_until_ready(img)

    assert img.shape == (batch, 3, resolution, resolution), img.shape
    assert bool(jnp.all(jnp.isfinite(img)))
    print("KERNEL_OK")
</pallas_src>

<mosaic_0001>
module attributes {stable_mosaic.version = 11 : i64} {
  func.func @_modconv3x3_block_kernel(%arg0: i32, %arg1: i32, %arg2: memref<1x6x6x32xbf16, #tpu.memory_space<vmem>>, %arg3: memref<1x288x32xbf16, #tpu.memory_space<vmem>>, %arg4: memref<1x1x32xf32, #tpu.memory_space<vmem>>, %arg5: memref<1x32xf32, #tpu.memory_space<vmem>>, %arg6: memref<1x4x4x32xbf16, #tpu.memory_space<vmem>>) attributes {dimension_semantics = [#tpu.dimension_semantics<parallel>, #tpu.dimension_semantics<parallel>], iteration_bounds = array<i64: 2, 1>, scalar_prefetch = 0 : i64, scratch_operands = 0 : i64, tpu.core_type = #tpu.core_type<tc>, window_params = [{transform_indices = @transform_0, window_bounds = array<i64: 1, 6, 6, 32>}, {transform_indices = @transform_1, window_bounds = array<i64: 1, 288, 32>}, {transform_indices = @transform_2, window_bounds = array<i64: 1, 1, 32>}, {pipeline_mode = #tpu.pipeline_mode<synchronous>, transform_indices = @transform_3, window_bounds = array<i64: 1, 32>}, {transform_indices = @transform_4, window_bounds = array<i64: 1, 4, 4, 32>}]} {
    %c4_i32 = arith.constant 4 : i32
    %0 = arith.muli %arg1, %c4_i32 : i32
    %1 = tpu.assume_multiple %0, 4 : i32
    %c0 = arith.constant 0 : index
    %2 = arith.index_cast %1 : i32 to index
    %c0_0 = arith.constant 0 : index
    %c0_1 = arith.constant 0 : index
    %3 = vector.load %arg2[%c0, %2, %c0_0, %c0_1] : memref<1x6x6x32xbf16, #tpu.memory_space<vmem>>, vector<1x6x6x32xbf16>
    %4 = vector.shape_cast %3 : vector<1x6x6x32xbf16> to vector<6x6x32xbf16>
    %c0_2 = arith.constant 0 : index
    %c0_3 = arith.constant 0 : index
    %c0_4 = arith.constant 0 : index
    %5 = vector.load %arg3[%c0_2, %c0_3, %c0_4] : memref<1x288x32xbf16, #tpu.memory_space<vmem>>, vector<1x288x32xbf16>
    %6 = vector.shape_cast %5 : vector<1x288x32xbf16> to vector<288x32xbf16>
    %cst = arith.constant 0.000000e+00 : f32
    %7 = vector.broadcast %cst : f32 to vector<16x32xf32>
    %8 = vector.extract_strided_slice %4 {offsets = [0, 0, 0], sizes = [4, 4, 32], strides = [1, 1, 1]} : vector<6x6x32xbf16> to vector<4x4x32xbf16>
    %9 = vector.shape_cast %8 : vector<4x4x32xbf16> to vector<16x32xbf16>
    %10 = vector.extract_strided_slice %6 {offsets = [0, 0], sizes = [32, 32], strides = [1, 1]} : vector<288x32xbf16> to vector<32x32xbf16>
    %cst_5 = arith.constant dense<0.000000e+00> : vector<16x32xf32>
    %11 = tpu.matmul %9, %10, %cst_5 {dimension_numbers = #tpu.dot_dimension_numbers<[1], [0], [0], [1], [0, 0, 1, 1], [], []>} : vector<16x32xbf16>, vector<32x32xbf16>, vector<16x32xf32> -> vector<16x32xf32>
    %12 = arith.addf %7, %11 : vector<16x32xf32>
    %13 = vector.extract_strided_slice %4 {offsets = [0, 1, 0], sizes = [4, 4, 32], strides = [1, 1, 1]} : vector<6x6x32xbf16> to vector<4x4x32xbf16>
    %14 = vector.shape_cast %13 : vector<4x4x32xbf16> to vector<16x32xbf16>
    %15 = vector.extract_strided_slice %6 {offsets = [32, 0], sizes = [32, 32], strides = [1, 1]} : vector<288x32xbf16> to vector<32x32xbf16>
    %cst_6 = arith.constant dense<0.000000e+00> : vector<16x32xf32>
    %16 = tpu.matmul %14, %15, %cst_6 {dimension_numbers = #tpu.dot_dimension_numbers<[1], [0], [0], [1], [0, 0, 1, 1], [], []>} : vector<16x32xbf16>, vector<32x32xbf16>, vector<16x32xf32> -> vector<16x32xf32>
    %17 = arith.addf %12, %16 : vector<16x32xf32>
    %18 = vector.extract_strided_slice %4 {offsets = [0, 2, 0], sizes = [4, 4, 32], strides = [1, 1, 1]} : vector<6x6x32xbf16> to vector<4x4x32xbf16>
    %19 = vector.shape_cast %18 : vector<4x4x32xbf16> to vector<16x32xbf16>
    %20 = vector.extract_strided_slice %6 {offsets = [64, 0], sizes = [32, 32], strides = [1, 1]} : vector<288x32xbf16> to vector<32x32xbf16>
    %cst_7 = arith.constant dense<0.000000e+00> : vector<16x32xf32>
    %21 = tpu.matmul %19, %20, %cst_7 {dimension_numbers = #tpu.dot_dimension_numbers<[1], [0], [0], [1], [0, 0, 1, 1], [], []>} : vector<16x32xbf16>, vector<32x32xbf16>, vector<16x32xf32> -> vector<16x32xf32>
    %22 = arith.addf %17, %21 : vector<16x32xf32>
    %23 = vector.extract_strided_slice %4 {offsets = [1, 0, 0], sizes = [4, 4, 32], strides = [1, 1, 1]} : vector<6x6x32xbf16> to vector<4x4x32xbf16>
    %24 = vector.shape_cast %23 : vector<4x4x32xbf16> to vector<16x32xbf16>
    %25 = vector.extract_strided_slice %6 {offsets = [96, 0], sizes = [32, 32], strides = [1, 1]} : vector<288x32xbf16> to vector<32x32xbf16>
    %cst_8 = arith.constant dense<0.000000e+00> : vector<16x32xf32>
    %26 = tpu.matmul %24, %25, %cst_8 {dimension_numbers = #tpu.dot_dimension_numbers<[1], [0], [0], [1], [0, 0, 1, 1], [], []>} : vector<16x32xbf16>, vector<32x32xbf16>, vector<16x32xf32> -> vector<16x32xf32>
    %27 = arith.addf %22, %26 : vector<16x32xf32>
    %28 = vector.extract_strided_slice %4 {offsets = [1, 1, 0], sizes = [4, 4, 32], strides = [1, 1, 1]} : vector<6x6x32xbf16> to vector<4x4x32xbf16>
    %29 = vector.shape_cast %28 : vector<4x4x32xbf16> to vector<16x32xbf16>
    %30 = vector.extract_strided_slice %6 {offsets = [128, 0], sizes = [32, 32], strides = [1, 1]} : vector<288x32xbf16> to vector<32x32xbf16>
    %cst_9 = arith.constant dense<0.000000e+00> : vector<16x32xf32>
    %31 = tpu.matmul %29, %30, %cst_9 {dimension_numbers = #tpu.dot_dimension_numbers<[1], [0], [0], [1], [0, 0, 1, 1], [], []>} : vector<16x32xbf16>, vector<32x32xbf16>, vector<16x32xf32> -> vector<16x32xf32>
    %32 = arith.addf %27, %31 : vector<16x32xf32>
    %33 = vector.extract_strided_slice %4 {offsets = [1, 2, 0], sizes = [4, 4, 32], strides = [1, 1, 1]} : vector<6x6x32xbf16> to vector<4x4x32xbf16>
    %34 = vector.shape_cast %33 : vector<4x4x32xbf16> to vector<16x32xbf16>
    %35 = vector.extract_strided_slice %6 {offsets = [160, 0], sizes = [32, 32], strides = [1, 1]} : vector<288x32xbf16> to vector<32x32xbf16>
    %cst_10 = arith.constant dense<0.000000e+00> : vector<16x32xf32>
    %36 = tpu.matmul %34, %35, %cst_10 {dimension_numbers = #tpu.dot_dimension_numbers<[1], [0], [0], [1], [0, 0, 1, 1], [], []>} : vector<16x32xbf16>, vector<32x32xbf16>, vector<16x32xf32> -> vector<16x32xf32>
    %37 = arith.addf %32, %36 : vector<16x32xf32>
    %38 = vector.extract_strided_slice %4 {offsets = [2, 0, 0], sizes = [4, 4, 32], strides = [1, 1, 1]} : vector<6x6x32xbf16> to vector<4x4x32xbf16>
    %39 = vector.shape_cast %38 : vector<4x4x32xbf16> to vector<16x32xbf16>
    %40 = vector.extract_strided_slice %6 {offsets = [192, 0], sizes = [32, 32], strides = [1, 1]} : vector<288x32xbf16> to vector<32x32xbf16>
    %cst_11 = arith.constant dense<0.000000e+00> : vector<16x32xf32>
    %41 = tpu.matmul %39, %40, %cst_11 {dimension_numbers = #tpu.dot_dimension_numbers<[1], [0], [0], [1], [0, 0, 1, 1], [], []>} : vector<16x32xbf16>, vector<32x32xbf16>, vector<16x32xf32> -> vector<16x32xf32>
    %42 = arith.addf %37, %41 : vector<16x32xf32>
    %43 = vector.extract_strided_slice %4 {offsets = [2, 1, 0], sizes = [4, 4, 32], strides = [1, 1, 1]} : vector<6x6x32xbf16> to vector<4x4x32xbf16>
    %44 = vector.shape_cast %43 : vector<4x4x32xbf16> to vector<16x32xbf16>
    %45 = vector.extract_strided_slice %6 {offsets = [224, 0], sizes = [32, 32], strides = [1, 1]} : vector<288x32xbf16> to vector<32x32xbf16>
    %cst_12 = arith.constant dense<0.000000e+00> : vector<16x32xf32>
    %46 = tpu.matmul %44, %45, %cst_12 {dimension_numbers = #tpu.dot_dimension_numbers<[1], [0], [0], [1], [0, 0, 1, 1], [], []>} : vector<16x32xbf16>, vector<32x32xbf16>, vector<16x32xf32> -> vector<16x32xf32>
    %47 = arith.addf %42, %46 : vector<16x32xf32>
    %48 = vector.extract_strided_slice %4 {offsets = [2, 2, 0], sizes = [4, 4, 32], strides = [1, 1, 1]} : vector<6x6x32xbf16> to vector<4x4x32xbf16>
    %49 = vector.shape_cast %48 : vector<4x4x32xbf16> to vector<16x32xbf16>
    %50 = vector.extract_strided_slice %6 {offsets = [256, 0], sizes = [32, 32], strides = [1, 1]} : vector<288x32xbf16> to vector<32x32xbf16>
    %cst_13 = arith.constant dense<0.000000e+00> : vector<16x32xf32>
    %51 = tpu.matmul %49, %50, %cst_13 {dimension_numbers = #tpu.dot_dimension_numbers<[1], [0], [0], [1], [0, 0, 1, 1], [], []>} : vector<16x32xbf16>, vector<32x32xbf16>, vector<16x32xf32> -> vector<16x32xf32>
    %52 = arith.addf %47, %51 : vector<16x32xf32>
    %c0_14 = arith.constant 0 : index
    %c0_15 = arith.constant 0 : index
    %c0_16 = arith.constant 0 : index
    %53 = vector.load %arg4[%c0_14, %c0_15, %c0_16] : memref<1x1x32xf32, #tpu.memory_space<vmem>>, vector<1x1x32xf32>
    %54 = vector.shape_cast %53 : vector<1x1x32xf32> to vector<1x32xf32>
    %55 = vector.broadcast %54 : vector<1x32xf32> to vector<16x32xf32>
    %56 = arith.mulf %52, %55 : vector<16x32xf32>
    %c0_17 = arith.constant 0 : index
    %c0_18 = arith.constant 0 : index
    %57 = vector.load %arg5[%c0_17, %c0_18] : memref<1x32xf32, #tpu.memory_space<vmem>>, vector<1x32xf32>
    %58 = vector.broadcast %57 : vector<1x32xf32> to vector<16x32xf32>
    %59 = arith.addf %56, %58 : vector<16x32xf32>
    %cst_19 = arith.constant 0.000000e+00 : f32
    %60 = vector.broadcast %cst_19 : f32 to vector<16x32xf32>
    %61 = arith.cmpf oge, %59, %60 : vector<16x32xf32>
    %cst_20 = arith.constant 2.000000e-01 : f32
    %62 = vector.broadcast %cst_20 : f32 to vector<16x32xf32>
    %63 = arith.mulf %62, %59 : vector<16x32xf32>
    %64 = arith.select %61, %59, %63 : vector<16x32xi1>, vector<16x32xf32>
    %65 = vector.shape_cast %64 : vector<16x32xf32> to vector<1x4x4x32xf32>
    %66 = arith.truncf %65 : vector<1x4x4x32xf32> to vector<1x4x4x32xbf16>
    %c0_21 = arith.constant 0 : index
    %c0_22 = arith.constant 0 : index
    %c0_23 = arith.constant 0 : index
    %c0_24 = arith.constant 0 : index
    %67 = vector.load %arg6[%c0_21, %c0_22, %c0_23, %c0_24] : memref<1x4x4x32xbf16, #tpu.memory_space<vmem>>, vector<1x4x4x32xbf16>
    tpu.vector_store %arg6[%c0_21, %c0_22, %c0_23, %c0_24], %66 {strides = array<i32>} : memref<1x4x4x32xbf16, #tpu.memory_space<vmem>>, vector<1x4x4x32xbf16>,
    return
  }
  func.func @transform_0(%arg0: i32, %arg1: i32) -> (i32, i32, i32, i32) {
    %c0_i32 = arith.constant 0 : i32
    %c0_i32_0 = arith.constant 0 : i32
    %c0_i32_1 = arith.constant 0 : i32
    %c0_i32_2 = arith.constant 0 : i32
    return %arg0, %c0_i32, %c0_i32_0, %c0_i32_1 : i32, i32, i32, i32
  }
  func.func @transform_1(%arg0: i32, %arg1: i32) -> (i32, i32, i32) {
    %c0_i32 = arith.constant 0 : i32
    %c0_i32_0 = arith.constant 0 : i32
    %c0_i32_1 = arith.constant 0 : i32
    return %arg0, %c0_i32, %c0_i32_0 : i32, i32, i32
  }
  func.func @transform_2(%arg0: i32, %arg1: i32) -> (i32, i32, i32) {
    %c0_i32 = arith.constant 0 : i32
    %c0_i32_0 = arith.constant 0 : i32
    %c0_i32_1 = arith.constant 0 : i32
    return %arg0, %c0_i32, %c0_i32_0 : i32, i32, i32
  }
  func.func @transform_3(%arg0: i32, %arg1: i32) -> (i32, i32) {
    %c0_i32 = arith.constant 0 : i32
    %c0_i32_0 = arith.constant 0 : i32
    %c0_i32_1 = arith.constant 0 : i32
    return %c0_i32, %c0_i32_0 : i32, i32
  }
  func.func @transform_4(%arg0: i32, %arg1: i32) -> (i32, i32, i32, i32) {
    %c0_i32 = arith.constant 0 : i32
    %c0_i32_0 = arith.constant 0 : i32
    %c0_i32_1 = arith.constant 0 : i32
    return %arg0, %arg1, %c0_i32, %c0_i32_0 : i32, i32, i32, i32
  }
}

</mosaic_0001>

<bundles_post_ra>
// kernel: tpu_custom_call.1
= control target key start
LH: loop header
LB: loop body
LE: loop exit
PB: predicated region body
PF: predicated region fallthrough
CT: control target
= control target key end

     0   :  { %9 = vsyncpa [#allocation3], 0  ;;  %s2005_s0 = inlined_call_operand.vmem [shape: bf16[2,6,6,32], index: 0, kind: input, shape index: {}]   ;;  %s2006_s1 = inlined_call_operand.vmem [shape: bf16[2,288,32], index: 1, kind: input, shape index: {}]   ;;  %s2007_s2 = inlined_call_operand.vmem [shape: f32[2,1,32], index: 2, kind: input, shape index: {}]   ;;  %s2008_s3 = inlined_call_operand.vmem [shape: f32[1,32], index: 3, kind: input, shape index: {}]   ;;  %s2009_s4 = inlined_call_operand.hbm [shape: bf16[2,4,4,32], index: 4, kind: output, shape index: {}]  }
   0x1   :  { %11 = vsyncpa [#allocation3 + $0x1], 0  ;;  %s1640_s15 = smov 0   ;;  %s1642_s16 = smov 0  }
   0x2   :  { %s1644_s17 = smov 0   ;;  %s1646_s18 = smov 0  }
   0x3   :  { %s1648_s19 = smov 0   ;;  %s1650_s20 = smov 0  }
   0x4 LB: > { %s1266_s21 = sadd.s32 4294967295, %s1607_s20   ;;  %s1267_s22 = sadd.s32 4294967294, %s1607_s20   ;;  %s1607_s20 = sphi %s1650_s20, %s17_s20   ;;  %s1603_s19 = sphi %s1648_s19, %s2020_s19   ;;  %s1599_s18 = sphi %s1646_s18, %s2019_s18   ;;  %s1595_s17 = sphi %s1644_s17, %s2018_s17   ;;  %s1591_s16 = sphi %s1642_s16, %s2017_s16   ;;  %s1587_s15 = sphi %s1640_s15, %s2016_s15  }
   0x5   : > { %s29_s23 = sadd.s32 1, %s1603_s19  ;;  %s137_s24 = sadd.s32 1, %s1595_s17 }
   0x6   : > { %p31_p0 = scmp.ge.s32.totalorder %s29_s23, 2  ;;  %p147_p1 = scmp.ne.s32.totalorder %s1595_s17, %s1591_s16 }
   0x7   : > { %p148_p2 = scmp.eq.s32.totalorder %s1266_s21, 1  ;;  %p153_p3 = scmp.ne.s32.totalorder %s1591_s16, %s1587_s15 }
   0x8   : > { %s2022_s23 = smov (%p31_p0, %s29_s23), 0  ;;  %p154_p5 = scmp.eq.s32.totalorder %s1267_s22, 1 }
   0x9   : > { %p1680_p4 = por %p148_p2, %p147_p1  ;;  %s132_s26 = ssub.s32 %s1603_s19, %s2022_s23 }
   0xa   : > { %p1270_p6 = scmp.ge.s32.totalorder %s1607_s20, 1  ;;  %p135_p7 = scmp.eq.s32.totalorder %s132_s26, 0 }
   0xb   : > { %p1687_p8 = por %p154_p5, %p153_p3  ;;  %p197_p9 = scmp.lt.s32.totalorder %s1607_s20, 3 }
   0xc   : > { %s1693_s28 = scalar_select %p135_p7, %s1595_s17, %s137_s24  }
   0xd   : > { %p198_p10 = pnand %p1270_p6, %p197_p9 }
   0xe   : > { %p231_p11 = scmp.lt.s32.totalorder (!%p198_p10), %s1599_s18, 1  ;;  %v298_v0 = vlaneseq (!%p198_p10)  ;;  %v1609_v1 = vmov (!%p198_p10), 0.0   ;;  %v1610_v2 = vmov (!%p198_p10), 1983009808   ;;  %vm1611_vm0 = vmmov (!%p198_p10), 0   ;;  %s228_s24 = sand.u32 (!%p198_p10), 1, %s1591_s16  }
   0xf   : > { %201 = sbr.rel (%p198_p10) target bundleno = 344 (0x158), region = 36  ;;  %1374 = vmatprep.subr.bf16.mxu0 (!%p198_p10), %v1609_v1  ;;  %1342 = vmatprep.subr.bf16.mxu1 (!%p198_p10), %v1609_v1  ;;  %v296_v3 = vunpack.c.l.s4 (!%p198_p10), %v1610_v2  ;;  %vm327_vm1 = vsmask.f32 (!%p198_p10), 1280  ;;  %vm328_vm2 = vsmask.f32 (!%p198_p10), 3336  ;;  %vm537_vm6 = vcmask (!%p198_p10), 1040384  }
  0x10   : > { %1346 = vmatprep.mubr.msk.bf16.mxu1 (!%p198_p10), %vm1611_vm0, %v1609_v1  ;;  %1378 = vmatprep.mubr.msk.bf16.mxu0 (!%p198_p10), %vm1611_vm0, %v1609_v1  ;;  %v299_v5 = vshrl.u32 (!%p198_p10), %v298_v0, 7  ;;  %vm330_vm3 = vsmask.f32 (!%p198_p10), 5392  ;;  %vm332_vm4 = vsmask.f32 (!%p198_p10), 7448  ;;  %vm329_vm5 = vmor (!%p198_p10), %vm327_vm1, %vm328_vm2  ;;  %vm538_vm7 = vcmask (!%p198_p10), 1042434  }
  0x11   : > { %v297_v4 = vunpack.c.0.s8 (!%p198_p10), %v296_v3  ;;  %vm331_vm8 = vmor (!%p198_p10), %vm329_vm5, %vm330_vm3  ;;  %vm540_vm11 = vcmask (!%p198_p10), 1044484   ;;  %vm542_vm13 = vcmask (!%p198_p10), 1046534   ;;  %vm419_vm15 = vcmask (!%p198_p10), 261120   ;;  %s1271_s26 = sshll.u32 (!%p198_p10), %s228_s24, 3  ;;  %s1612_s10 = smov (!%p198_p10), [#allocation2]  }
  0x12   : > { %vm1792_vm9 = vmor (!%p198_p10), %vm331_vm8, %vm332_vm4  ;;  %vm1149_vm1 = vcmask (!%p198_p10), 254976  }
  0x13   : > { %v1719_v8 = vsub.s32 (!%p198_p10), %v297_v4, %v299_v5  ;;  %vm539_vm10 = vmor (!%p198_p10), %vm537_vm6, %vm538_vm7 }
  0x14   : > { %vm541_vm12 = vmor (!%p198_p10), %vm539_vm10, %vm540_vm11 }
  0x15   : > { %vm1824_vm14 = vmor (!%p198_p10), %vm541_vm12, %vm542_vm13 }
  0x16   : > { %s1699_s29 = scalar_select %p231_p11, %s1599_s18, 1 }
  0x18   : > { %s1445_s30 = smul.u32 144, %s1699_s29  ;;  %s243_s14 = scalar_lea.vmem %s2007_s2, %s1699_s29 }
  0x19   : > { %s1444_s5 = smul.u32 24, %s1699_s29  ;;  %s1314_s29 = sshll.u32 %s1599_s18, 7 }
  0x1a   : > { %s1710_s8 = scalar_lea.vmem %s2006_s1, %s1445_s30  ;;  %s230_s30 = scalar_lea.vmem [#allocation2], %s1271_s26 }
  0x1b   : > { %v1506_v6 = vld [vmem:[%s1710_s8 + $0x40] sm:$0xff]   ;;  %v1507_v7 = vld [vmem:[%s1710_s8 + $0x10] sm:$0xff]   ;;  %s1717_s11 = scalar_lea.vmem %s2005_s0, %s1444_s5  ;;  %v1508_v9 = vld [vmem:[%s1710_s8 + $0x48] sm:$0xff]   ;;  %s1170_s5 = sshll.u32 %s230_s30, 4  ;;  %s1952_s5 = int_to_ptr.vmem [resolvable:$true] %s1170_s5 }
  0x1c   : > { %1375 = vmatpush3.bf16.msra.mxu0 %v1506_v6  ;;  %1343 = vmatpush3.bf16.msra.mxu1 %v1507_v7  ;;  %v1509_v10 = vld [vmem:[%s1710_s8 + $0x18] sm:$0xff]   ;;  %v1726_v11 = vld [vmem:[%s1717_s11] sm:$0x7]  ;;  %v1729_v12 = vld [vmem:[%s1717_s11 + $0x4] sm:$0x7]  ;;  %s1959_s18 = scalar_lea.sflag [#allocation3], %s228_s24 }
  0x1d   : > { %1376 = vmatprep.subr.bf16.mxu0 %v1609_v1  ;;  %1344 = vmatprep.subr.bf16.mxu1 %v1609_v1  ;;  %v1732_v13 = vld [vmem:[%s1717_s11 + $0x8] sm:$0x7]  ;;  %v1735_v14 = vld [vmem:[%s1717_s11 + $0xc] sm:$0x7]  ;;  %v1738_v15 = vld [vmem:[%s1717_s11 + $0x10] sm:$0x7]  ;;  %v1742_v16 = vrot.slane %v1726_v11, %v1719_v8  ;;  %v1746_v17 = vrot.slane %v1729_v12, %v1719_v8 }
  0x1e   : > { %v1750_v18 = vrot.slane %v1732_v13, %v1719_v8  ;;  %v1754_v19 = vrot.slane %v1735_v14, %v1719_v8  ;;  %v1758_v20 = vrot.slane %v1738_v15, %v1719_v8  ;;  %v1523_v45 = vld [vmem:[%s1710_s8 + $0x78] sm:$0xff]   ;;  %s1529_s9 = scalar_lea.vmem %s1952_s5, 128 }
  0x1f   : > { %v1763_v21 = vcombine.high %v1742_v16, %v1742_v16  ;;  %v1767_v22 = vcombine.high %v1746_v17, %v1746_v17  ;;  %v335_v24 = vshrl.u32 %v1742_v16, 16  ;;  %v338_v26 = vshll.u32 %v1742_v16, 16  ;;  %p1530_p12 = scmp.ne.s32.totalorder %s1952_s5, %s1529_s9 }
  0x20   : > { %1377 = vmatpush3.bf16.msra.mxu0 %v1508_v9  ;;  %1345 = vmatpush3.bf16.msra.mxu1 %v1509_v10  ;;  %v1771_v23 = vcombine.high %v1750_v18, %v1750_v18  ;;  %v1778_v25 = vcombine.high %v1754_v19, %v1754_v19  ;;  %v349_v27 = vshrl.u32 %v1746_v17, 16  ;;  %v352_v28 = vshll.u32 %v1746_v17, 16 }
  0x21   : > { %1382 = vmatprep.subr.bf16.mxu0 %v1609_v1  ;;  %1350 = vmatprep.subr.bf16.mxu1 %v1609_v1  ;;  %v337_v29 = vrot.slane %v335_v24, 6  ;;  %v344_v30 = vshll.u32 %v1763_v21, 16  ;;  %v358_v31 = vshll.u32 %v1767_v22, 16  ;;  %v363_v32 = vshrl.u32 %v1750_v18, 16  ;;  %p1531_p13 = pnand %p1530_p12, %p1680_p4 }
  0x22   : > { %v340_v33 = vrot.slane %v338_v26, 7  ;;  %v351_v34 = vrot.slane %v349_v27, 6  ;;  %v354_v35 = vrot.slane %v352_v28, 7  ;;  %v366_v36 = vshll.u32 %v1750_v18, 16 }
  0x23   : > { %v346_v37 = vrot.slane %v344_v30, 7  ;;  %v360_v38 = vrot.slane %v358_v31, 7  ;;  %v365_v39 = vrot.slane %v363_v32, 6  ;;  %v372_v40 = vshll.u32 %v1771_v23, 16  ;;  %p1532_p0 = pneg %p1531_p13 }
  0x24   : > { %v341_v41 = vor.u32 %v340_v33, %v337_v29  ;;  %v355_v42 = vor.u32 %v354_v35, %v351_v34  ;;  %v368_v43 = vrot.slane %v366_v36, 7  ;;  %v377_v44 = vshrl.u32 %v1754_v19, 16  ;;  %v1511_v36 = vld [vmem:[%s1710_s8] sm:$0xff]  }
  0x25   : > { %v374_v46 = vrot.slane %v372_v40, 7  ;;  %v380_v47 = vshll.u32 %v1754_v19, 16  ;;  %v386_v48 = vshll.u32 %v1778_v25, 16  ;;  %v718_v49 = vcombine.high %v1758_v20, %v1758_v20  ;;  %v1510_v40 = vld [vmem:[%s1710_s8 + $0x50] sm:$0xff]  }
  0x26   : > { %v342_v50 = vrot.slane %v341_v41, 2  ;;  %v356_v51 = vrot.slane %v355_v42, 2  ;;  %v369_v52 = vor.u32 %v368_v43, %v365_v39  ;;  %v379_v53 = vrot.slane %v377_v44, 6  ;;  %v254_v42 = vld [vmem:[%s1717_s11 + $0x14] sm:$0x7]  ;;  %v1513_v44 = vld [vmem:[%s1710_s8 + $0x8] sm:$0xff]  }
  0x27   : > { %v382_v54 = vrot.slane %v380_v47, 7  ;;  %v388_v55 = vrot.slane %v386_v48, 7  ;;  %v720_v56 = vshrl.u32 %v1758_v20, 16  ;;  %v723_v57 = vshll.u32 %v1758_v20, 16  ;;  %s1533_s11 = sshll.u32 %s1612_s10, 4  ;;  %s1534_s11 = int_to_ptr.vmem [resolvable:$false] %s1533_s11 }
  0x28   : > { %v347_v58 = vsel %vm1792_vm9, %v342_v50, %v346_v37  ;;  %v361_v59 = vsel %vm1792_vm9, %v356_v51, %v360_v38  ;;  %v370_v60 = vrot.slane %v369_v52, 2  ;;  %v729_v61 = vshll.u32 %v718_v49, 16  ;;  %s1535_s12 = scalar_lea.vmem %s1534_s11, 256  ;;  %p1536_p1 = scmp.lt.s32.totalorder %s1952_s5, %s1534_s11 }
  0x29   : > { %v383_v62 = vor.u32 %v382_v54, %v379_v53  ;;  %v722_v63 = vrot.slane %v720_v56, 6  ;;  %v725_v0 = vrot.slane %v723_v57, 7  ;;  %v390_v3 = vcombine.low %v347_v58, %v361_v59  ;;  %p1537_p2 = scmp.lt.s32.totalorder %s1535_s12, %s1529_s9 }
  0x2a   : > { %v375_v2 = vsel %vm1792_vm9, %v370_v60, %v374_v46  ;;  %v731_v6 = vrot.slane %v729_v61, 7  ;;  %v1281_v29 = vrot.slane %v1746_v17, 9  ;;  %v550_v30 = vrot.slane %v1767_v22, 7 }
  0x2b   : > { %v384_v4 = vrot.slane %v383_v62, 2  ;;  %v726_v5 = vor.u32 %v725_v0, %v722_v63  ;;  %v733_v7 = vcombine.low %v361_v59, %v375_v2  ;;  %v398_v26 = vrot.slane %v390_v3, %v1719_v8  ;;  %v1517_v59 = vld [vmem:[%s1710_s8 + $0x20] sm:$0xff]   ;;  %v1519_v3 = vld [vmem:[%s1710_s8 + $0x28] sm:$0xff]   ;;  %p1538_p3 = por %p1537_p2, %p1536_p1 }
  0x2c   : > { %v1282_v34 = vrot.slane %v1750_v18, 9  ;;  %v554_v35 = vrot.slane %v1771_v23, 7  ;;  %v1283_v17 = vrot.slane %v1754_v19, 9  ;;  %v558_v22 = vrot.slane %v1778_v25, 7  ;;  %v1516_v63 = vld [vmem:[%s1710_s8 + $0x60] sm:$0xff]  }
  0x2d   : > { %v389_v9 = vsel %vm1792_vm9, %v384_v4, %v388_v55  ;;  %v727_v10 = vrot.slane %v726_v5, 2  ;;  %v741_v28 = vrot.slane %v733_v7, %v1719_v8  ;;  %v1293_v39 = vrot.slane %v1758_v20, 9  ;;  %v1518_v7 = vld [vmem:[%s1710_s8 + $0x68] sm:$0xff]   ;;  %p1539_p5 = pnand %p1538_p3, %p1532_p0 }
  0x2e   : > { %v391_v24 = vcombine.low %v375_v2, %v389_v9  ;;  %v551_v41 = vsel %vm1824_vm14, %v1281_v29, %v550_v30  ;;  %v555_v18 = vsel %vm1824_vm14, %v1282_v34, %v554_v35  ;;  %v559_v23 = vsel %vm1824_vm14, %v1283_v17, %v558_v22  ;;  %v1522_v30 = vld [vmem:[%s1710_s8 + $0x30] sm:$0xff]   ;;  %v1524_v22 = vld [vmem:[%s1710_s8 + $0x38] sm:$0xff]  }
  0x2f   : > { %v1815_v27 = vsel %vm1792_vm9, %v727_v10, %v731_v6  ;;  %v810_v19 = vrot.slane %v718_v49, 7  ;;  %v464_v43 = vcombine.low %v1726_v11, %v1729_v12  ;;  %v465_v20 = vcombine.low %v1732_v13, %v1735_v14  ;;  %v1512_v49 = vld [vmem:[%s1710_s8 + $0x58] sm:$0xff]   ;;  %v1521_v35 = vld [vmem:[%s1710_s8 + $0x70] sm:$0xff]  }
  0x30   : > { %v1821_v31 = vrot.slane %v391_v24, %v1719_v8  ;;  %v734_v32 = vcombine.low %v389_v9, %v1815_v27  ;;  %v812_v47 = vcombine.low %v551_v41, %v555_v18  ;;  %v1860_v11 = vrot.slane %v254_v42, %v1719_v8 }
  0x31   : > { %v1854_v46 = vsel %vm1824_vm14, %v1293_v39, %v810_v19  ;;  %v472_v50 = vrot.slane %v464_v43, %v1719_v8  ;;  %v479_v51 = vrot.slane %v465_v20, %v1719_v8  ;;  %v1280_v52 = vrot.slane %v1742_v16, 9 }
  0x32   : > { %v406_v37 = vcombine.low %v398_v26, %v1821_v31  ;;  %v748_v38 = vrot.slane %v734_v32, %v1719_v8  ;;  %v813_v48 = vcombine.low %v559_v23, %v1854_v46  ;;  %v546_v53 = vrot.slane %v1763_v21, 7 }
  0x33   : > { %v820_v54 = vrot.slane %v812_v47, %v1719_v8  ;;  %v964_v56 = vshrl.u32 %v1860_v11, 16  ;;  %v967_v57 = vshll.u32 %v1860_v11, 16  ;;  %v480_v58 = vcombine.low %v472_v50, %v479_v51 }
  0x34   : > { %1347 = vmatmul.mubr.msk.bf16.vlgmr.msra.gmra.mrb[0].mxu1 %vm419_vm15, %v406_v37  ;;  %v749_v25 = vcombine.low %v741_v28, %v748_v38  ;;  %v827_v55 = vrot.slane %v813_v48, %v1719_v8  ;;  %v547_v16 = vsel %vm1824_vm14, %v1280_v52, %v546_v53  ;;  %v962_v60 = vcombine.high %v1860_v11, %v1860_v11 }
  0x35   : > { %1351 = vmatpush3.bf16.msra.mxu1 %v1511_v36  ;;  %1354 = vmatprep.mubr.msk.bf16.mxu1 %vm1611_vm0, %v1609_v1  ;;  %v966_v61 = vrot.slane %v964_v56, 6  ;;  %v969_v62 = vrot.slane %v967_v57, 7  ;;  %v560_v0 = vcombine.low %v547_v16, %v551_v41  ;;  %v561_v2 = vcombine.low %v555_v18, %v559_v23  ;;  %v1528_v23 = vld [vmem:[%s1710_s8 + $0x88] sm:$0xff]  }
  0x36   : > { %1379 = vmatmul.mubr.msk.bf16.vlgmr.msra.gmra.mrb[0].mxu0 %vm419_vm15, %v749_v25  ;;  %1352 = vmatprep.subr.bf16.mxu1 %v1609_v1  ;;  %v828_v21 = vcombine.low %v820_v54, %v827_v55  ;;  %v888_v4 = vcombine.low %v1738_v15, %v254_v42  ;;  %v973_v6 = vshll.u32 %v962_v60, 16  ;;  %v636_v36 = vcombine.low %v1729_v12, %v1732_v13 }
  0x37   : > { %1383 = vmatpush3.bf16.msra.mxu0 %v1510_v40  ;;  %1386 = vmatprep.mubr.msk.bf16.mxu0 %vm1611_vm0, %v1609_v1  ;;  %v970_v5 = vor.u32 %v969_v62, %v966_v61  ;;  %v568_v9 = vrot.slane %v560_v0, %v1719_v8  ;;  %v575_v10 = vrot.slane %v561_v2, %v1719_v8  ;;  %v1527_v40 = vld [vmem:[%s1710_s8 + $0x80] sm:$0xff]   ;;  %s1950_s8 = scalar_lea.hbm %s2009_s4, %s1314_s29 }
  0x38   : > { %1384 = vmatprep.subr.bf16.mxu0 %v1609_v1  ;;  %v895_v24 = vrot.slane %v888_v4, %v1719_v8  ;;  %v975_v28 = vrot.slane %v973_v6, 7  ;;  %v637_v17 = vcombine.low %v1735_v14, %v1738_v15  ;;  %v644_v12 = vrot.slane %v636_v36, %v1719_v8 }
  0x39   : > { %1353 = vmatpush3.bf16.msra.mxu1 %v1513_v44  ;;  %v971_v26 = vrot.slane %v970_v5, 2  ;;  %v576_v29 = vcombine.low %v568_v9, %v575_v10  ;;  %v1303_v15 = vrot.slane %v1860_v11, 9  ;;  %v1307_v44 = vld [vmem:[%s243_s14] ss:$0 sm:$0xff] }
  0x3a   : > { %1358 = vmatprep.subr.bf16.mxu1 %v1609_v1  ;;  %v896_v32 = vcombine.low %v479_v51, %v895_v24  ;;  %v651_v13 = vrot.slane %v637_v17, %v1719_v8 }
  0x3b   : > { %1385 = vmatpush3.bf16.msra.mxu0 %v1512_v49  ;;  %v976_v34 = vsel %vm1792_vm9, %v971_v26, %v975_v28 }
  0x3c   : > { %1390 = vmatprep.subr.bf16.mxu0 %v1609_v1  ;;  %v977_v37 = vcombine.low %v1815_v27, %v976_v34  ;;  %v1046_v27 = vrot.slane %v962_v60, 7  ;;  %v652_v38 = vcombine.low %v644_v12, %v651_v13 }
  0x3e   : > { %v984_v14 = vrot.slane %v977_v37, %v1719_v8  ;;  %v1047_v41 = vsel %vm1824_vm14, %v1303_v15, %v1046_v27 }
  0x3f   : > { %v1048_v18 = vcombine.low %v1854_v46, %v1047_v41 }
  0x40   : > { %1355 = vmatmul.mubr.msk.bf16.vlgmr.msra.gmra.mrb[0].mxu1 %vm419_vm15, %v480_v58  ;;  %v985_v39 = vcombine.low %v1821_v31, %v984_v14 }
  0x41   : > { %1359 = vmatpush3.bf16.msra.mxu1 %v1517_v59  ;;  %1362 = vmatprep.mubr.msk.bf16.mxu1 %vm1611_vm0, %v1609_v1  ;;  %v1055_v31 = vrot.slane %v1048_v18, %v1719_v8  ;;  %v1308_v8 = vld [vmem:[%s2008_s3] ss:$0 sm:$0xff] }
  0x42   : > { %1387 = vmatmul.mubr.msk.bf16.vlgmr.msra.gmra.mrb[0].mxu0 %vm419_vm15, %v828_v21  ;;  %1360 = vmatprep.subr.bf16.mxu1 %v1609_v1 }
  0x43   : > { %1391 = vmatpush3.bf16.msra.mxu0 %v1516_v63  ;;  %1394 = vmatprep.mubr.msk.bf16.mxu0 %vm1611_vm0, %v1609_v1  ;;  %v1056_v33 = vcombine.low %v575_v10, %v1055_v31 }
  0x44   : > { %1392 = vmatprep.subr.bf16.mxu0 %v1609_v1 }
  0x45   : > { %1361 = vmatpush3.bf16.msra.mxu1 %v1519_v3 }
  0x46   : > { %1366 = vmatprep.subr.bf16.mxu1 %v1609_v1 }
  0x47   : > { %1393 = vmatpush3.bf16.msra.mxu0 %v1518_v7 }
  0x48   : > { %1398 = vmatprep.subr.bf16.mxu0 %v1609_v1 }
  0x4c   : > { %1363 = vmatmul.mubr.msk.bf16.vlgmr.msra.gmra.mrb[0].mxu1 %vm419_vm15, %v576_v29 }
  0x4d   : > { %1367 = vmatpush3.bf16.msra.mxu1 %v1522_v30  ;;  %1370 = vmatprep.mubr.msk.bf16.mxu1 %vm1611_vm0, %v1609_v1 }
  0x4e   : > { %1395 = vmatmul.mubr.msk.bf16.vlgmr.msra.gmra.mrb[0].mxu0 %vm419_vm15, %v896_v32  ;;  %1368 = vmatprep.subr.bf16.mxu1 %v1609_v1 }
  0x4f   : > { %1399 = vmatpush3.bf16.msra.mxu0 %v1521_v35  ;;  %1402 = vmatprep.mubr.msk.bf16.mxu0 %vm1611_vm0, %v1609_v1 }
  0x50   : > { %1400 = vmatprep.subr.bf16.mxu0 %v1609_v1 }
  0x51   : > { %1369 = vmatpush3.bf16.msra.mxu1 %v1524_v22 }
  0x53   : > { %1401 = vmatpush3.bf16.msra.mxu0 %v1523_v45 }
  0x54   : > { %1406 = vmatprep.subr.bf16.mxu0 %v1609_v1 }
  0x58   : > { %1371 = vmatmul.mubr.msk.bf16.vlgmr.msra.gmra.mrb[0].mxu1 %vm419_vm15, %v652_v38 }
  0x5a   : > { %1403 = vmatmul.mubr.msk.bf16.vlgmr.msra.gmra.mrb[0].mxu0 %vm419_vm15, %v985_v39 }
  0x5b   : > { %1407 = vmatpush3.bf16.msra.mxu0 %v1527_v40  ;;  %1410 = vmatprep.mubr.msk.bf16.mxu0 %vm1611_vm0, %v1609_v1 }
  0x5c   : > { %1408 = vmatprep.subr.bf16.mxu0 %v1609_v1 }
  0x5f   : > { %1409 = vmatpush3.bf16.msra.mxu0 %v1528_v23 }
  0x66   : > { %1411 = vmatmul.mubr.msk.bf16.vlgmr.msra.gmra.mrb[0].mxu0 %vm419_vm15, %v1056_v33 }
 0x12b   : > { %v702_v19 = vpop.f32.mrb[0].mxu1 }
 0x12c   : > { %v1372_v42 = vpop.f32.mrb[1].mxu1 }
 0x12d   : > { %v705_v25 = vpop.f32.mrb[2].mxu1 }
 0x12e   : > { %v1373_v43 = vpop.f32.mrb[3].mxu1 }
 0x139   : > { %v1106_v20 = vpop.f32.mrb[0].mxu0 }
 0x13a   : > { %v1414_v46 = vadd.f32 %v1106_v20, %v702_v19  ;;  %v1412_v1 = vpop.f32.mrb[1].mxu0 }
 0x13b   : > { %v1109_v47 = vpop.f32.mrb[2].mxu0 }
 0x13c   : > { %v1122_v48 = vmul.f32 %v1414_v46, %v1307_v44  ;;  %v1415_v11 = vadd.f32 %v1109_v47, %v705_v25  ;;  %v1413_v49 = vpop.f32.mrb[3].mxu0 }
 0x13e   : > { %v1131_v50 = vadd.f32 %v1308_v8, %v1122_v48  ;;  %v1123_v51 = vmul.f32 %v1415_v11, %v1307_v44 }
 0x140   : > { %vm1133_vm0 = vcmp.ge.f32.partialorder %v1131_v50, 0.0  ;;  %v1135_v52 = vmul.f32 0.2, %v1131_v50  ;;  %v1132_v53 = vadd.f32 %v1308_v8, %v1123_v51 }
 0x142   : > { %v1137_v54 = vsel %vm1133_vm0, %v1131_v50, %v1135_v52  ;;  %vm1134_vm2 = vcmp.ge.f32.partialorder %v1132_v53, 0.0  ;;  %v1136_v55 = vmul.f32 0.2, %v1132_v53 }
 0x143   : > { %v1141_v56 = vcombine.high %v1137_v54, %v1137_v54  ;;  %v1145_v57 = vpack.c.bf16 %v1137_v54, %v1137_v54 }
 0x144   : > { %v1138_v58 = vsel %vm1134_vm2, %v1132_v53, %v1136_v55 }
 0x145   : > { %v1146_v59 = vpack.c.bf16 %v1141_v56, %v1141_v56  ;;  %1150 = vst.msk [vmem:[%s230_s30] sm:$0x3] %vm1149_vm1, %v1145_v57  ;;  %v1142_v16 = vcombine.high %v1138_v58, %v1138_v58  ;;  %v1147_v21 = vpack.c.bf16 %v1138_v58, %v1138_v58 }
 0x147   : > { %1151 = vst.msk [vmem:[%s230_s30 + $0x2] sm:$0x3] %vm1149_vm1, %v1146_v59  ;;  %v1148_v60 = vpack.c.bf16 %v1142_v16, %v1142_v16  ;;  %1152 = vst.msk [vmem:[%s230_s30 + $0x4] sm:$0x3] %vm1149_vm1, %v1147_v21 }
 0x149   : > { %1153 = vst.msk [vmem:[%s230_s30 + $0x6] sm:$0x3] %vm1149_vm1, %v1148_v60 }
 0x14a   : > { %1542 = shalt.err (!%p1539_p5)
}
 0x14b   : > { %s1543_s13 = scalar_lea.hbm %s1950_s8, 128  ;;  %s1547_s22 = scalar_lea.hbm %s2009_s4, 256 }
 0x14c   : > { %p1544_p6 = scmp.ne.s32.totalorder %s1950_s8, %s1543_s13  ;;  %p1548_p10 = scmp.lt.u32.totalorder %s1950_s8, %s2009_s4 }
 0x14d   : > { %p1549_p11 = scmp.lt.u32.totalorder %s1547_s22, %s1543_s13  ;;  %p1551_p13 = scmp.lt.u32.totalorder %s1543_s13, %s1950_s8 }
 0x14e   : > { %p1545_p7 = pnand %p1544_p6, %p1680_p4 }
 0x14f   : > { %p1550_p12 = por %p1549_p11, %p1548_p10 }
 0x150   : > { %p1546_p9 = pneg %p1545_p7 }
 0x151   : > { %p1552_p0 = por %p1551_p13, %p1550_p12 }
 0x153   : > { %p1553_p1 = pnand %p1552_p0, %p1546_p9 }
 0x155   : > { %1556 = shalt.err (!%p1553_p1)
}
 0x156   : > { %s1613_s29 = smov 32   ;;  %s1614_s30 = smov 2  }
 0x157   : > { %1446 = dma.vmem_to_hbm [thread:$0]  (%p1680_p4), %s1952_s5, 128, %s1950_s8, %s1959_s18, %s1613_s29, %s1613_s29, %s1614_s30  }
 0x158 PF: > { %p1452_p2 = scmp.ge.s32.totalorder %s1607_s20, 2  ;;  %s1185_s6 = sand.u32 1, %s1587_s15  }
 0x159   : > { %s1186_s7 = scalar_lea.sflag [#allocation3], %s1185_s6 }
 0x15a   : > { %p1449_p3 = pnand %p1452_p2, %p1687_p8 }
 0x15c   : > { %1582 = dma.done.wait (!%p1449_p3), %s1186_s7, 128  }
 0x15d   : > { %1584 = vsyncadd (!%p1449_p3), %s1186_s7, 4294967168  ;;  %s17_s20 = sadd.s32 1, %s1607_s20   ;;  %s2016_s15 = smov %s1591_s16 }
 0x15e   : > { %p14_p5 = scmp.ge.s32.totalorder %s17_s20, 4   ;;  %s2017_s16 = smov %s1595_s17 }
 0x15f   : > { %s2018_s17 = smov %s1693_s28  ;;  %s2019_s18 = smov %s1603_s19 }
 0x160   : > { %s2020_s19 = smov %s2022_s23  ;;  %16 = sbr.rel (!%p14_p5) target bundleno = 4 (0x4), region = 78 }
 0x167   :  { %1191 = vsyncpa [#allocation3], 1 }
 0x168   :  { %1193 = vsyncpa [#allocation3 + $0x1], 1 }

</bundles_post_ra>
